<compile_context>
chip_gen: v5e
topology: v5e:2x2
jax: 0.10.0
libtpu: 0.0.40
codegen_flags: <defaults>
</compile_context>

<pallas_src>
import functools

import jax
import jax.numpy as jnp
from jax.experimental import pallas as pl
from jax.experimental.pallas import tpu as pltpu


def _pick_tile(n, cap):
    """Largest multiple-of-8 tile <= cap that divides n, else a single full block."""
    for cand in (512, 256, 128, 64, 32, 16, 8):
        if cand <= cap and n % cand == 0:
            return cand
    return n


def _vmem_limit_bytes():
    """Derive the scoped-VMEM limit from the chip (v7x: 64 MiB/core, v5e/v6e: 128 MiB)."""
    try:
        cap = int(pltpu.get_tpu_info().vmem_capacity_bytes)
    except Exception:  # pragma: no cover - conservative fallback (v7x per-core VMEM)
        cap = 64 * 1024 * 1024
    return max(32 * 1024 * 1024, min(cap - 12 * 1024 * 1024, 100 * 1024 * 1024))


def _make_kernel(batch, n, rt, ct, inv_t):
    inv_t = float(inv_t)

    def kernel(q_ref, k_ref, out_ref, den_ref, pos_ref):
        # q_ref:  (rt, D)  pre-normalized rows (already scaled by 1/sqrt(t), MXU dtype)
        # k_ref:  (ct, D)  pre-normalized column block (same array, different tiling)
        # out_ref:(rt, 1)  per-row loss (written on the last column step)
        # den_ref/pos_ref: (rt, 1) f32 VMEM accumulators
        i = pl.program_id(0)   # row block     ("parallel")
        j = pl.program_id(1)   # column block  ("arbitrary" reduction axis)

        @pl.when(j == 0)
        def _init():
            den_ref[...] = jnp.zeros_like(den_ref)
            pos_ref[...] = jnp.zeros_like(pos_ref)

        # (rt, ct) similarity tile on the MXU: contract the feature axis directly
        # (no transpose); inputs are already cosine-normalized with 1/sqrt(t)
        # folded in, so s == cos_sim / temperature.  f32 accumulation.
        s = jax.lax.dot_general(
            q_ref[...], k_ref[...], (((1,), (1,)), ((), ())),
            preferred_element_type=jnp.float32)

        rows_g = i * rt + jax.lax.broadcasted_iota(jnp.int32, (rt, ct), 0)
        cols_g = j * ct + jax.lax.broadcasted_iota(jnp.int32, (rt, ct), 1)
        self_mask = cols_g == rows_g
        # Partner index is (row + B) mod 2B; the two un-modded comparisons cover it.
        pos_mask = (cols_g == rows_g + batch) | (cols_g == rows_g - batch)

        # Denominator: sum_{c != r} exp(s_rc - 1/t).  LSE shift = 1/t (exact row
        # max after normalization); diagonal removed exactly via the mask.
        e = jnp.exp(s - inv_t)
        den_ref[...] += jnp.sum(jnp.where(self_mask, 0.0, e),
                                axis=-1, keepdims=True)
        # Positive logit for each row, read from the same MXU-computed tile.
        pos_ref[...] += jnp.sum(jnp.where(pos_mask, s, 0.0),
                                axis=-1, keepdims=True)

        @pl.when(j == pl.num_programs(1) - 1)
        def _finalize():
            den = jnp.maximum(den_ref[...], 1e-30)
            # -log(exp(pos) / sum_{c != r} exp(s_rc)) == -pos + 1/t + log(den)
            out_ref[...] = (inv_t - pos_ref[...] + jnp.log(den)).astype(out_ref.dtype)

    return kernel


@functools.partial(jax.jit, static_argnames=("temperature", "mxu_dtype",
                                              "row_tile", "col_tile"))
def vision_contrastive_loss(embed_1, embed_2, temperature=0.5, *,
                            mxu_dtype=jnp.bfloat16, row_tile=None, col_tile=None):
    """Forward pass of VisionContrastiveLoss; the O(N^2 D) hot path is one Pallas kernel."""
    if embed_1.ndim != 2 or embed_1.shape != embed_2.shape:
        raise ValueError("embed_1 / embed_2 must be (batch, feature) with equal shapes")
    batch, feat = embed_1.shape
    n = 2 * batch
    inv_t = 1.0 / float(temperature)

    # Hoisted pre-processing (O(N*D), fused by XLA): concat, L2-normalize, fold
    # 1/sqrt(temperature), cast to the MXU input dtype.  The kernel then sees an
    # operand whose pairwise dot products are exactly cos_sim / temperature.
    e = jnp.concatenate([embed_1, embed_2], axis=0).astype(jnp.float32)
    ssq = jnp.sum(e * e, axis=-1, keepdims=True)
    # Reference (F.cosine_similarity) clamps the norm *product* at 1e-8; for
    # non-degenerate rows the per-row clamp below is equivalent.
    en = (e * jax.lax.rsqrt(jnp.maximum(ssq, 1e-16)) * (inv_t ** 0.5)).astype(mxu_dtype)

    rt = int(row_tile) if row_tile is not None else _pick_tile(n, 128)
    ct = int(col_tile) if col_tile is not None else _pick_tile(n, 512)
    if n % rt != 0 or (rt != n and rt % 8 != 0):
        raise ValueError(f"bad row_tile={rt} for 2*batch={n}")
    if n % ct != 0 or (ct != n and ct % 8 != 0):
        raise ValueError(f"bad col_tile={ct} for 2*batch={n}")

    kernel = _make_kernel(batch, n, rt, ct, inv_t)

    grid_spec = pltpu.PrefetchScalarGridSpec(
        num_scalar_prefetch=0,
        grid=(n // rt, n // ct),
        in_specs=[
            pl.BlockSpec((rt, feat), lambda i, j: (i, 0)),   # query rows (constant over j)
            pl.BlockSpec((ct, feat), lambda i, j: (j, 0)),   # key column block (streams)
        ],
        out_specs=pl.BlockSpec((rt, 1), lambda i, j: (i, 0)),
        scratch_shapes=[
            pltpu.VMEM((rt, 1), jnp.float32),   # denominator accumulator
            pltpu.VMEM((rt, 1), jnp.float32),   # positive-logit accumulator
        ],
    )
    per_row = pl.pallas_call(
        kernel,
        out_shape=jax.ShapeDtypeStruct((n, 1), jnp.float32),
        grid_spec=grid_spec,
        compiler_params=pltpu.CompilerParams(
            dimension_semantics=("parallel", "arbitrary"),
            vmem_limit_bytes=_vmem_limit_bytes()),
    )(en, en)

    # Tiny O(N) epilogue: mean over the 2B per-row losses.
    return jnp.sum(per_row) / (2.0 * batch)


def _reference_loss(embed_1, embed_2, temperature=0.5):
    """Pure-JAX mirror of the PyTorch module (for the correctness check)."""
    b = embed_1.shape[0]
    e = jnp.concatenate([embed_1, embed_2], axis=0).astype(jnp.float32)
    norms = jnp.sqrt(jnp.sum(e * e, axis=-1, keepdims=True))
    sim = (e @ e.T) / jnp.maximum(norms * norms.T, 1e-8)
    n = 2 * b
    idx = jnp.arange(n)
    positives = sim[idx, (idx + b) % n]    # == cat([diag(sim, B), diag(sim, -B)])
    nominator = jnp.exp(positives / temperature)
    neg_mask = 1.0 - jnp.eye(n, dtype=jnp.float32)
    denominator = jnp.sum(neg_mask * jnp.exp(sim / temperature), axis=1)
    return jnp.sum(-jnp.log(nominator / denominator)) / (2.0 * b)


if __name__ == "__main__":
    key = jax.random.PRNGKey(0)
    k1, k2, k3, k4, k5, k6 = jax.random.split(key, 6)
    temperature = 0.5

    # A: tiny batch, single (1,1) grid block.            batch=4,  hidden=32
    # B: forced small tiles -> 4x4 grid (both axes).     batch=32, hidden=128
    # C: default tile picker -> 3x3 grid.                batch=96, hidden=64
    configs = [
        (jax.random.normal(k1, (4, 32), jnp.float32),
         jax.random.normal(k2, (4, 32), jnp.float32), {}),
        (jax.random.normal(k3, (32, 128), jnp.float32),
         jax.random.normal(k4, (32, 128), jnp.float32),
         dict(row_tile=16, col_tile=16)),
        (jax.random.normal(k5, (96, 64), jnp.float32),
         jax.random.normal(k6, (96, 64), jnp.float32), {}),
    ]

    for e1, e2, kw in configs:
        ref = _reference_loss(e1, e2, temperature)

        # f32 MXU path: tight check against the reference.
        out_f32 = jax.block_until_ready(
            vision_contrastive_loss(e1, e2, temperature, mxu_dtype=jnp.float32, **kw))
        assert jnp.allclose(out_f32, ref, rtol=1e-4, atol=1e-4), (out_f32, ref)

        # bf16 MXU path (default fast configuration): looser tolerance.
        out_bf16 = jax.block_until_ready(
            vision_contrastive_loss(e1, e2, temperature, **kw))
        assert jnp.allclose(out_bf16, ref, rtol=5e-2, atol=5e-2), (out_bf16, ref)

    print("KERNEL_OK")
</pallas_src>

<mosaic_0001>
module attributes {stable_mosaic.version = 11 : i64} {
  func.func @kernel(%arg0: i32, %arg1: i32, %arg2: memref<8x32xf32, #tpu.memory_space<vmem>>, %arg3: memref<8x32xf32, #tpu.memory_space<vmem>>, %arg4: memref<8x1xf32, #tpu.memory_space<vmem>>, %arg5: memref<8x1xf32, #tpu.memory_space<vmem>>, %arg6: memref<8x1xf32, #tpu.memory_space<vmem>>) attributes {dimension_semantics = [#tpu.dimension_semantics<parallel>, #tpu.dimension_semantics<arbitrary>], iteration_bounds = array<i64: 1, 1>, scalar_prefetch = 0 : i64, scratch_operands = 2 : i64, tpu.core_type = #tpu.core_type<tc>, window_params = [{transform_indices = @transform_0, window_bounds = array<i64: 8, 32>}, {transform_indices = @transform_1, window_bounds = array<i64: 8, 32>}, {transform_indices = @transform_2, window_bounds = array<i64: 8, 1>}]} {
    %c0_i32 = arith.constant 0 : i32
    %0 = arith.cmpi eq, %arg1, %c0_i32 : i32
    %1 = arith.extui %0 : i1 to i32
    %c0_i32_0 = arith.constant 0 : i32
    %2 = arith.cmpi ne, %1, %c0_i32_0 : i32
    scf.if %2 {
      %cst_21 = arith.constant 0.000000e+00 : f32
      %42 = vector.broadcast %cst_21 : f32 to vector<8x1xf32>
      %c0_22 = arith.constant 0 : index
      %c0_23 = arith.constant 0 : index
      %43 = vector.load %arg5[%c0_22, %c0_23] : memref<8x1xf32, #tpu.memory_space<vmem>>, vector<8x1xf32>
      tpu.vector_store %arg5[%c0_22, %c0_23], %42 {strides = array<i32>} : memref<8x1xf32, #tpu.memory_space<vmem>>, vector<8x1xf32>,
      %cst_24 = arith.constant 0.000000e+00 : f32
      %44 = vector.broadcast %cst_24 : f32 to vector<8x1xf32>
      %c0_25 = arith.constant 0 : index
      %c0_26 = arith.constant 0 : index
      %45 = vector.load %arg6[%c0_25, %c0_26] : memref<8x1xf32, #tpu.memory_space<vmem>>, vector<8x1xf32>
      tpu.vector_store %arg6[%c0_25, %c0_26], %44 {strides = array<i32>} : memref<8x1xf32, #tpu.memory_space<vmem>>, vector<8x1xf32>,
    } else {
    }
    %c0 = arith.constant 0 : index
    %c0_1 = arith.constant 0 : index
    %3 = vector.load %arg2[%c0, %c0_1] : memref<8x32xf32, #tpu.memory_space<vmem>>, vector<8x32xf32>
    %c0_2 = arith.constant 0 : index
    %c0_3 = arith.constant 0 : index
    %4 = vector.load %arg3[%c0_2, %c0_3] : memref<8x32xf32, #tpu.memory_space<vmem>>, vector<8x32xf32>
    %cst = arith.constant dense<0.000000e+00> : vector<8x8xf32>
    %5 = tpu.matmul %3, %4, %cst {dimension_numbers = #tpu.dot_dimension_numbers<[1], [1], [0], [0], [0, 0, 1, 0], [], []>} : vector<8x32xf32>, vector<8x32xf32>, vector<8x8xf32> -> vector<8x8xf32>
    %c8_i32 = arith.constant 8 : i32
    %6 = arith.muli %arg0, %c8_i32 : i32
    %7 = tpu.iota {dimensions = array<i32: 0>} : vector<8x8xi32>
    %8 = vector.broadcast %6 : i32 to vector<8x8xi32>
    %9 = arith.addi %8, %7 : vector<8x8xi32>
    %c8_i32_4 = arith.constant 8 : i32
    %10 = arith.muli %arg1, %c8_i32_4 : i32
    %11 = tpu.iota {dimensions = array<i32: 1>} : vector<8x8xi32>
    %12 = vector.broadcast %10 : i32 to vector<8x8xi32>
    %13 = arith.addi %12, %11 : vector<8x8xi32>
    %14 = arith.cmpi eq, %13, %9 : vector<8x8xi32>
    %c4_i32 = arith.constant 4 : i32
    %15 = vector.broadcast %c4_i32 : i32 to vector<8x8xi32>
    %16 = arith.addi %9, %15 : vector<8x8xi32>
    %17 = arith.cmpi eq, %13, %16 : vector<8x8xi32>
    %c4_i32_5 = arith.constant 4 : i32
    %18 = vector.broadcast %c4_i32_5 : i32 to vector<8x8xi32>
    %19 = arith.subi %9, %18 : vector<8x8xi32>
    %20 = arith.cmpi eq, %13, %19 : vector<8x8xi32>
    %21 = arith.ori %17, %20 : vector<8x8xi1>
    %cst_6 = arith.constant 2.000000e+00 : f32
    %22 = vector.broadcast %cst_6 : f32 to vector<8x8xf32>
    %23 = arith.subf %5, %22 : vector<8x8xf32>
    %24 = math.exp %23 : vector<8x8xf32>
    %c0_7 = arith.constant 0 : index
    %c0_8 = arith.constant 0 : index
    %25 = vector.load %arg5[%c0_7, %c0_8] : memref<8x1xf32, #tpu.memory_space<vmem>>, vector<8x1xf32>
    %cst_9 = arith.constant 0.000000e+00 : f32
    %26 = vector.broadcast %cst_9 : f32 to vector<8x8xf32>
    %27 = arith.select %14, %26, %24 : vector<8x8xi1>, vector<8x8xf32>
    %cst_10 = arith.constant dense<0.000000e+00> : vector<8xf32>
    %28 = vector.multi_reduction <add>, %27, %cst_10 [1] : vector<8x8xf32> to vector<8xf32>
    %29 = vector.shape_cast %28 : vector<8xf32> to vector<8x1xf32>
    %30 = arith.addf %25, %29 : vector<8x1xf32>
    %c0_11 = arith.constant 0 : index
    %c0_12 = arith.constant 0 : index
    %31 = vector.load %arg5[%c0_11, %c0_12] : memref<8x1xf32, #tpu.memory_space<vmem>>, vector<8x1xf32>
    tpu.vector_store %arg5[%c0_11, %c0_12], %30 {strides = array<i32>} : memref<8x1xf32, #tpu.memory_space<vmem>>, vector<8x1xf32>,
    %c0_13 = arith.constant 0 : index
    %c0_14 = arith.constant 0 : index
    %32 = vector.load %arg6[%c0_13, %c0_14] : memref<8x1xf32, #tpu.memory_space<vmem>>, vector<8x1xf32>
    %cst_15 = arith.constant 0.000000e+00 : f32
    %33 = vector.broadcast %cst_15 : f32 to vector<8x8xf32>
    %34 = arith.select %21, %5, %33 : vector<8x8xi1>, vector<8x8xf32>
    %cst_16 = arith.constant dense<0.000000e+00> : vector<8xf32>
    %35 = vector.multi_reduction <add>, %34, %cst_16 [1] : vector<8x8xf32> to vector<8xf32>
    %36 = vector.shape_cast %35 : vector<8xf32> to vector<8x1xf32>
    %37 = arith.addf %32, %36 : vector<8x1xf32>
    %c0_17 = arith.constant 0 : index
    %c0_18 = arith.constant 0 : index
    %38 = vector.load %arg6[%c0_17, %c0_18] : memref<8x1xf32, #tpu.memory_space<vmem>>, vector<8x1xf32>
    tpu.vector_store %arg6[%c0_17, %c0_18], %37 {strides = array<i32>} : memref<8x1xf32, #tpu.memory_space<vmem>>, vector<8x1xf32>,
    %c0_i32_19 = arith.constant 0 : i32
    %39 = arith.cmpi eq, %arg1, %c0_i32_19 : i32
    %40 = arith.extui %39 : i1 to i32
    %c0_i32_20 = arith.constant 0 : i32
    %41 = arith.cmpi ne, %40, %c0_i32_20 : i32
    scf.if %41 {
      %c0_21 = arith.constant 0 : index
      %c0_22 = arith.constant 0 : index
      %42 = vector.load %arg5[%c0_21, %c0_22] : memref<8x1xf32, #tpu.memory_space<vmem>>, vector<8x1xf32>
      %cst_23 = arith.constant 1.000000e-30 : f32
      %43 = vector.broadcast %cst_23 : f32 to vector<8x1xf32>
      %44 = arith.maximumf %42, %43 : vector<8x1xf32>
      %c0_24 = arith.constant 0 : index
      %c0_25 = arith.constant 0 : index
      %45 = vector.load %arg6[%c0_24, %c0_25] : memref<8x1xf32, #tpu.memory_space<vmem>>, vector<8x1xf32>
      %cst_26 = arith.constant 2.000000e+00 : f32
      %46 = vector.broadcast %cst_26 : f32 to vector<8x1xf32>
      %47 = arith.subf %46, %45 : vector<8x1xf32>
      %48 = math.log %44 : vector<8x1xf32>
      %49 = arith.addf %47, %48 : vector<8x1xf32>
      %c0_27 = arith.constant 0 : index
      %c0_28 = arith.constant 0 : index
      %50 = vector.load %arg4[%c0_27, %c0_28] : memref<8x1xf32, #tpu.memory_space<vmem>>, vector<8x1xf32>
      tpu.vector_store %arg4[%c0_27, %c0_28], %49 {strides = array<i32>} : memref<8x1xf32, #tpu.memory_space<vmem>>, vector<8x1xf32>,
    } else {
    }
    return
  }
  func.func @transform_0(%arg0: i32, %arg1: i32) -> (i32, i32) {
    %c0_i32 = arith.constant 0 : i32
    %c0_i32_0 = arith.constant 0 : i32
    return %arg0, %c0_i32 : i32, i32
  }
  func.func @transform_1(%arg0: i32, %arg1: i32) -> (i32, i32) {
    %c0_i32 = arith.constant 0 : i32
    %c0_i32_0 = arith.constant 0 : i32
    return %arg1, %c0_i32 : i32, i32
  }
  func.func @transform_2(%arg0: i32, %arg1: i32) -> (i32, i32) {
    %c0_i32 = arith.constant 0 : i32
    %c0_i32_0 = arith.constant 0 : i32
    return %arg0, %c0_i32 : i32, i32
  }
}

</mosaic_0001>

<bundles_post_ra>
// kernel: vision_contrastive_loss.1
= control target key start
LH: loop header
LB: loop body
LE: loop exit
PB: predicated region body
PF: predicated region fallthrough
CT: control target
= control target key end

     0   :  { %vm20_vm0 = vcmask 261120   ;;  %vm15_vm1 = vcmask 7168   ;;  %v106_v2 = vmov 0.0   ;;  %v48_v4 = vlaneseq  ;;  %s136_s1 = inlined_call_operand.vmem [shape: f32[8,32], index: 1, kind: input, shape index: {}, may-alias: {0,1}]   ;;  %s137_s0 = inlined_call_operand.vmem [shape: f32[8,32], index: 0, kind: input, shape index: {}, may-alias: {0,1}]   ;;  %s138_s2 = inlined_call_operand.vmem [shape: f32[8,1], index: 2, kind: output, shape index: {}]  }
   0x1   :  { %v19_v0 = vld [vmem:[%s136_s1] sm:$0xff]  ;;  %16 = vst.msk [vmem:[#allocation2] sm:$0xff] %vm15_vm1, %v106_v2  ;;  %vm68_vm5 = vcmask 64512  }
   0x2   :  { %97 = vmatpush.xpose.msk.msra.mxu0 %vm20_vm0, %v19_v0  ;;  %v18_v1 = vld [vmem:[%s137_s0] sm:$0xff]  ;;  %17 = vst.msk [vmem:[#allocation3] sm:$0xff] %vm15_vm1, %v106_v2  ;;  %v49_v7 = vshrl.u32 %v48_v4, 7  ;;  %v54_v8 = vand.u32 127, %v48_v4 }
   0x4   :  { %v58_v9 = vadd.s32 4, %v49_v7  ;;  %v99_v10 = vadd.s32 4294967292, %v49_v7  ;;  %vm57_vm2 = vcmp.eq.s32.totalorder %v54_v8, %v49_v7 }
   0x5   :  { %98 = vmatmul.msk.f32.vlgmr.msra.gmra.mxu0 %vm20_vm0, %v18_v1 }
   0x6   :  { %vm59_vm3 = vcmp.eq.s32.totalorder %v54_v8, %v58_v9  ;;  %vm61_vm4 = vcmp.eq.s32.totalorder %v54_v8, %v99_v10 }
   0x7   :  { %vm62_vm6 = vmor %vm59_vm3, %vm61_vm4 }
   0x8   :  { %v66_v16 = vld [vmem:[#allocation2] sm:$0xff] }
   0x9   :  { %v75_v19 = vld [vmem:[#allocation3] sm:$0xff] }
  0x82   :  { %v44_v3 = vpop.f32.mrf.mxu0 }
  0x83   :  { %v100_v5 = vadd.f32 -2.0, %v44_v3  ;;  %v76_v14 = vsel %vm62_vm6, %v44_v3, 0.0 }
  0x84   :  { %v77_v15 = vsel %vm68_vm5, %v76_v14, 0.0 }
  0x85   :  { %v64_v6 = vmul.f32 1.442695, %v100_v5 }
  0x87   :  { %102 = vpow2.f32 %v64_v6 }
  0x8d   :  { %v103_v11 = vpop.eup %102 }
  0x8e   :  { %v67_v12 = vsel %vm57_vm2, 0.0, %v103_v11 }
  0x8f   :  { %v69_v13 = vsel %vm68_vm5, %v67_v12, 0.0 }
  0x90   :  { %70 = vadd.xlane.f32.xlu0 %v69_v13 }
  0x98   :  { %78 = vadd.xlane.f32.xlu0 %v77_v15 }
 0x103   :  { %v71_v17 = vpop.xlane.xlu0 %70 }
 0x104   :  { %v72_v18 = vadd.f32 %v71_v17, %v66_v16 }
 0x106   :  { %74 = vst.msk [vmem:[#allocation2] sm:$0xff] %vm15_vm1, %v72_v18 }
 0x10b   :  { %v79_v20 = vpop.xlane.xlu0 %78 }
 0x10c   :  { %v80_v21 = vadd.f32 %v79_v20, %v75_v19 }
 0x10d   :  { %v85_v22 = vld [vmem:[#allocation2] sm:$0xff] }
 0x10e   :  { %v86_v23 = vmax.f32 %v85_v22, 1e-30  ;;  %81 = vst.msk [vmem:[#allocation3] sm:$0xff] %vm15_vm1, %v80_v21 }
 0x110   :  { %104 = vlog2.f32 %v86_v23 }
 0x115   :  { %v87_v24 = vld [vmem:[#allocation3] sm:$0xff] }
 0x116   :  { %v105_v25 = vpop.eup %104  ;;  %v88_v26 = vsub.f32 2.0, %v87_v24 }
 0x117   :  { %v90_v27 = vmul.f32 0.6931472, %v105_v25 }
 0x119   :  { %v91_v28 = vadd.f32 %v90_v27, %v88_v26 }
 0x11b   :  { %92 = vst.msk [vmem:[%s138_s2] sm:$0xff] %vm15_vm1, %v91_v28 }

</bundles_post_ra>
